<compile_context>
chip_gen: v6e
topology: v6e:2x2x1
jax: 0.10.0
libtpu: 0.0.40
codegen_flags: <defaults>
</compile_context>

<pallas_src>
import jax
import jax.numpy as jnp
from jax.experimental import pallas as pl
from jax.experimental.pallas import tpu as pltpu


def _se_kernel(x_ref, wa_ref, wf_ref, o_ref):
    # x_ref block: (Bt, C, HWp) float32, HWp a multiple of 128 (lane-dense).
    x = x_ref[...]

    # --- squeeze: spatial sum over the lane axis (1/HW folded into wa_t) ---
    y = jnp.sum(x, axis=-1)                                    # (Bt, C)

    # --- four reduction branches fused: one matmul + ReLU ---
    # wa_ref = concat([w1, w2, w3, w4], axis=0).T / (H*W)  -> (C, 4*hidden)
    h = jnp.maximum(
        jnp.dot(y, wa_ref[...], preferred_element_type=jnp.float32), 0.0
    )                                                          # (Bt, 4*hidden)

    # --- excite FC + sigmoid ---
    # wf_ref = wf.T -> (4*hidden, C)
    s = jax.nn.sigmoid(
        jnp.dot(h, wf_ref[...], preferred_element_type=jnp.float32)
    )                                                          # (Bt, C)

    # --- channel-wise rescale; s broadcasts across the spatial (lane) axis ---
    o_ref[...] = (x * s[:, :, None]).astype(o_ref.dtype)


def _vmem_capacity_bytes():
    # Generation-aware VMEM capacity; fall back to the smallest (v7x: 64 MiB/TC).
    try:
        return int(pltpu.get_tpu_info().vmem_capacity_bytes)
    except Exception:
        return 64 << 20


def _num_tensorcores_per_device():
    # Only multi-TC parts (v7x, fused-megacore v4/v5p) benefit from forcing
    # >= 2 grid steps; v5e/v6e have a single TensorCore per device.
    try:
        kind = jax.devices()[0].device_kind.lower()
    except Exception:
        return 1
    if "v7" in kind or "v4" in kind or "v5p" in kind:
        return 2
    return 1


def se_layer(x_nchw, w1, w2, w3, w4, wf, *, block_batch=None,
             target_block_bytes=4 << 20):
    """x_nchw: (B, C, H, W) float32; weights as in the PyTorch module:
       w1..w4: (C//r, C); wf: (C, 4*(C//r))."""
    B, C, H, W = x_nchw.shape
    HW = H * W
    hidden = w1.shape[0]

    # --- host-side weight prep: fuse the 4 branches, pre-transpose, and fold
    #     the 1/HW pooling normalization into the fused branch weight ---------
    wa_t = (jnp.concatenate([w1, w2, w3, w4], axis=0).T
            * jnp.float32(1.0 / HW)).astype(jnp.float32)       # (C, 4*hidden)
    wf_t = wf.T.astype(jnp.float32)                            # (4*hidden, C)

    # --- lane-dense spatial axis: zero-pad HW up to a multiple of 128 --------
    HWp = ((HW + 127) // 128) * 128
    x3 = x_nchw.reshape(B, C, HW)
    if HWp != HW:
        x3 = jnp.pad(x3, ((0, 0), (0, 0), (0, HWp - HW)))

    itemsize = x3.dtype.itemsize
    bytes_per_batch = C * HWp * itemsize

    # --- batch tile: ~target_block_bytes input blocks (roofline plateau);
    #     force >= num_cores grid steps only when there really are >1 TCs -----
    ncores = _num_tensorcores_per_device()
    if block_batch is None:
        bt = max(1, min(B, target_block_bytes // bytes_per_batch))
        if ncores > 1 and B >= ncores and pl.cdiv(B, bt) < ncores:
            bt = pl.cdiv(B, ncores)
    else:
        bt = max(1, min(block_batch, B))

    # --- VMEM budget: real itemsizes, double-buffered in+out, per-gen cap ----
    w_bytes = (wa_t.size * wa_t.dtype.itemsize
               + wf_t.size * wf_t.dtype.itemsize) * 2          # conservative x2
    vmem_cap = _vmem_capacity_bytes()
    cap = (40 << 20) if vmem_cap <= (64 << 20) else (48 << 20)

    def _needed(bt_):
        return 2 * 2 * bt_ * bytes_per_batch + w_bytes          # 2 bufs x (in+out)

    while bt > 1 and _needed(bt) > cap:
        bt = max(1, bt // 2)
    needed = _needed(bt)
    # TODO(synk): add an HW-tiled two-pass fallback (squeeze-accumulate pass +
    # rescale pass) for shapes where a single batch element exceeds the cap.
    vmem_limit = int(min(max(needed + (4 << 20), 16 << 20), cap))

    grid_b = pl.cdiv(B, bt)

    out3 = pl.pallas_call(
        _se_kernel,
        out_shape=jax.ShapeDtypeStruct((B, C, HWp), x3.dtype),
        grid_spec=pltpu.PrefetchScalarGridSpec(
            num_scalar_prefetch=0,
            grid=(grid_b,),
            in_specs=[
                pl.BlockSpec((bt, C, HWp), lambda b: (b, 0, 0)),
                # Grid-invariant weights (constant index_map): fetched once,
                # kept VMEM-resident by the pipeline.
                pl.BlockSpec((C, 4 * hidden), lambda b: (0, 0)),
                pl.BlockSpec((4 * hidden, C), lambda b: (0, 0)),
            ],
            out_specs=pl.BlockSpec((bt, C, HWp), lambda b: (b, 0, 0)),
        ),
        compiler_params=pltpu.CompilerParams(
            dimension_semantics=("parallel",),
            vmem_limit_bytes=vmem_limit,
        ),
    )(x3, wa_t, wf_t)

    if HWp != HW:
        out3 = out3[:, :, :HW]
    return out3.reshape(B, C, H, W)


def se_layer_ref(x, w1, w2, w3, w4, wf):
    """Pure-JAX reference matching the PyTorch forward."""
    y = jnp.mean(x, axis=(2, 3))                                # (B, C)

    def br(w):
        return jnp.maximum(y @ w.T, 0.0)

    y_cat = jnp.concatenate([br(w1), br(w2), br(w3), br(w4)], axis=1)
    s = jax.nn.sigmoid(y_cat @ wf.T)                            # (B, C)
    return x * s[:, :, None, None]


if __name__ == "__main__":
    def _make_inputs(key, B, C, H, W, reduction):
        hidden = C // reduction
        kx, k1, k2, k3, k4, kf = jax.random.split(key, 6)
        x = jax.random.normal(kx, (B, C, H, W), dtype=jnp.float32)
        si = 1.0 / jnp.sqrt(jnp.float32(C))
        w1 = jax.random.normal(k1, (hidden, C), dtype=jnp.float32) * si
        w2 = jax.random.normal(k2, (hidden, C), dtype=jnp.float32) * si
        w3 = jax.random.normal(k3, (hidden, C), dtype=jnp.float32) * si
        w4 = jax.random.normal(k4, (hidden, C), dtype=jnp.float32) * si
        sf = 1.0 / jnp.sqrt(jnp.float32(4 * hidden))
        wf = jax.random.normal(kf, (C, 4 * hidden), dtype=jnp.float32) * sf
        return x, w1, w2, w3, w4, wf

    key = jax.random.PRNGKey(0)
    k0, k1 = jax.random.split(key)

    # Case 1: in_channel=64, reduction=16, H=W=16 -> HW=256 (lane-dense path).
    args = _make_inputs(k0, 4, 64, 16, 16, 16)
    out = jax.block_until_ready(se_layer(*args))
    ref = se_layer_ref(*args)
    assert out.shape == args[0].shape
    assert jnp.allclose(out, ref, atol=1e-5, rtol=1e-5), "mismatch (256 spatial)"

    # Case 2: realistic 7x7 spatial stage -> padded lane-dense path.
    args = _make_inputs(k1, 2, 32, 7, 7, 16)
    out = jax.block_until_ready(se_layer(*args))
    ref = se_layer_ref(*args)
    assert out.shape == args[0].shape
    assert jnp.allclose(out, ref, atol=1e-5, rtol=1e-5), "mismatch (7x7 spatial)"

    print("KERNEL_OK")
</pallas_src>

<mosaic_0001>
module attributes {stable_mosaic.version = 11 : i64} {
  func.func @_se_kernel(%arg0: i32, %arg1: memref<4x64x256xf32, #tpu.memory_space<vmem>>, %arg2: memref<64x16xf32, #tpu.memory_space<vmem>>, %arg3: memref<16x64xf32, #tpu.memory_space<vmem>>, %arg4: memref<4x64x256xf32, #tpu.memory_space<vmem>>) attributes {dimension_semantics = [#tpu.dimension_semantics<parallel>], iteration_bounds = array<i64: 1>, scalar_prefetch = 0 : i64, scratch_operands = 0 : i64, tpu.core_type = #tpu.core_type<tc>, window_params = [{transform_indices = @transform_0, window_bounds = array<i64: 4, 64, 256>}, {pipeline_mode = #tpu.pipeline_mode<synchronous>, transform_indices = @transform_1, window_bounds = array<i64: 64, 16>}, {pipeline_mode = #tpu.pipeline_mode<synchronous>, transform_indices = @transform_2, window_bounds = array<i64: 16, 64>}, {transform_indices = @transform_3, window_bounds = array<i64: 4, 64, 256>}]} {
    %c0 = arith.constant 0 : index
    %c0_0 = arith.constant 0 : index
    %c0_1 = arith.constant 0 : index
    %0 = vector.load %arg1[%c0, %c0_0, %c0_1] : memref<4x64x256xf32, #tpu.memory_space<vmem>>, vector<4x64x256xf32>
    %cst = arith.constant dense<0.000000e+00> : vector<4x64xf32>
    %1 = vector.multi_reduction <add>, %0, %cst [2] : vector<4x64x256xf32> to vector<4x64xf32>
    %c0_2 = arith.constant 0 : index
    %c0_3 = arith.constant 0 : index
    %2 = vector.load %arg2[%c0_2, %c0_3] : memref<64x16xf32, #tpu.memory_space<vmem>>, vector<64x16xf32>
    %cst_4 = arith.constant dense<0.000000e+00> : vector<4x16xf32>
    %3 = tpu.matmul %1, %2, %cst_4 {dimension_numbers = #tpu.dot_dimension_numbers<[1], [0], [0], [1], [0, 0, 1, 1], [], []>} : vector<4x64xf32>, vector<64x16xf32>, vector<4x16xf32> -> vector<4x16xf32>
    %cst_5 = arith.constant 0.000000e+00 : f32
    %4 = vector.broadcast %cst_5 : f32 to vector<4x16xf32>
    %5 = arith.maximumf %3, %4 : vector<4x16xf32>
    %c0_6 = arith.constant 0 : index
    %c0_7 = arith.constant 0 : index
    %6 = vector.load %arg3[%c0_6, %c0_7] : memref<16x64xf32, #tpu.memory_space<vmem>>, vector<16x64xf32>
    %cst_8 = arith.constant dense<0.000000e+00> : vector<4x64xf32>
    %7 = tpu.matmul %5, %6, %cst_8 {dimension_numbers = #tpu.dot_dimension_numbers<[1], [0], [0], [1], [0, 0, 1, 1], [], []>} : vector<4x16xf32>, vector<16x64xf32>, vector<4x64xf32> -> vector<4x64xf32>
    %8 = arith.negf %7 : vector<4x64xf32>
    %9 = math.exp %8 : vector<4x64xf32>
    %cst_9 = arith.constant 1.000000e+00 : f32
    %10 = vector.broadcast %cst_9 : f32 to vector<4x64xf32>
    %11 = arith.addf %10, %9 : vector<4x64xf32>
    %12 = arith.divf %10, %11 : vector<4x64xf32>
    %13 = vector.shape_cast %12 : vector<4x64xf32> to vector<4x64x1xf32>
    %14 = vector.broadcast %13 : vector<4x64x1xf32> to vector<4x64x256xf32>
    %15 = arith.mulf %0, %14 : vector<4x64x256xf32>
    %c0_10 = arith.constant 0 : index
    %c0_11 = arith.constant 0 : index
    %c0_12 = arith.constant 0 : index
    %16 = vector.load %arg4[%c0_10, %c0_11, %c0_12] : memref<4x64x256xf32, #tpu.memory_space<vmem>>, vector<4x64x256xf32>
    tpu.vector_store %arg4[%c0_10, %c0_11, %c0_12], %15 {strides = array<i32>} : memref<4x64x256xf32, #tpu.memory_space<vmem>>, vector<4x64x256xf32>,
    return
  }
  func.func @transform_0(%arg0: i32) -> (i32, i32, i32) {
    %c0_i32 = arith.constant 0 : i32
    %c0_i32_0 = arith.constant 0 : i32
    %c0_i32_1 = arith.constant 0 : i32
    return %arg0, %c0_i32, %c0_i32_0 : i32, i32, i32
  }
  func.func @transform_1(%arg0: i32) -> (i32, i32) {
    %c0_i32 = arith.constant 0 : i32
    %c0_i32_0 = arith.constant 0 : i32
    %c0_i32_1 = arith.constant 0 : i32
    return %c0_i32, %c0_i32_0 : i32, i32
  }
  func.func @transform_2(%arg0: i32) -> (i32, i32) {
    %c0_i32 = arith.constant 0 : i32
    %c0_i32_0 = arith.constant 0 : i32
    %c0_i32_1 = arith.constant 0 : i32
    return %c0_i32, %c0_i32_0 : i32, i32
  }
  func.func @transform_3(%arg0: i32) -> (i32, i32, i32) {
    %c0_i32 = arith.constant 0 : i32
    %c0_i32_0 = arith.constant 0 : i32
    %c0_i32_1 = arith.constant 0 : i32
    return %arg0, %c0_i32, %c0_i32_0 : i32, i32, i32
  }
}

</mosaic_0001>

<bundles_post_ra>
// kernel: tpu_custom_call.1
= control target key start
LH: loop header
LB: loop body
LE: loop exit
PB: predicated region body
PF: predicated region fallthrough
CT: control target
= control target key end

     0   :  { %8 = vsyncpa [#allocation3], 0  ;;  %s1416_s0 = inlined_call_operand.hbm [shape: f32[4,64,256], index: 0, kind: input, shape index: {}]   ;;  %s1417_s1 = inlined_call_operand.vmem [shape: f32[64,16], index: 1, kind: input, shape index: {}]   ;;  %s1418_s2 = inlined_call_operand.vmem [shape: f32[16,64], index: 2, kind: input, shape index: {}]   ;;  %s1419_s3 = inlined_call_operand.hbm [shape: f32[4,64,256], index: 3, kind: output, shape index: {}]  }
   0x1   :  { %9 = vsyncpa [#allocation4], 0  ;;  %s943_s12 = smov [#allocation2]  }
   0x2   :  { %s15_s13 = sshll.u32 %s943_s12, 4  ;;  %s16_s13 = int_to_ptr.vmem [resolvable:$true] %s15_s13 }
   0x3   :  { %s907_s14 = scalar_lea.vmem %s16_s13, 8192  ;;  %p912_p1 = scmp.lt.s32.totalorder %s16_s13, %s16_s13 }
   0x4   :  { %p908_p0 = scmp.ne.s32.totalorder %s16_s13, %s907_s14  ;;  %p913_p2 = scmp.lt.s32.totalorder %s907_s14, %s907_s14 }
   0x6   :  { %p914_p3 = por %p913_p2, %p912_p1 }
   0x8   :  { %p915_p4 = pnand %p914_p3, %p908_p0 }
   0xa   :  { %918 = shalt.err (!%p915_p4)
}
   0xb   :  { %s944_s15 = smov 256   ;;  %s945_s16 = smov 16  }
   0xc   :  { %21 = dma.hbm_to_vmem [thread:$0]  %s1416_s0, 8192, %s16_s13, [#allocation3], %s944_s15, %s944_s15, %s945_s16  }
   0xd   :  { %939 = dma.done.wait [#allocation3], 8192  }
   0xe   :  { %940 = vsyncadd [#allocation3], 4294959104  ;;  %v975_v0 = vld [vmem:[#allocation2 + $0x80] sm:$0xff]  ;;  %v977_v1 = vld [vmem:[#allocation2 + $0x88] sm:$0xff]  ;;  %vm947_vm0 = vmmov 0   ;;  %vm240_vm1 = vcmask 130112  }
   0xf   :  { %v979_v2 = vld [vmem:[#allocation2] sm:$0xff]  ;;  %v117_v3 = vadd.f32 %v977_v1, %v975_v0  ;;  %v983_v4 = vld [vmem:[#allocation2 + $0x8] sm:$0xff]  ;;  %v985_v5 = vld [vmem:[#allocation2 + $0x90] sm:$0xff]  ;;  %vm247_vm2 = vcmask 195712   ;;  %vm254_vm3 = vcmask 261312   ;;  %vm261_vm4 = vcmask 326912  }
  0x10   :  { %1465 = vst [vmem:[#allocation8_spill] sm:$0xff] %v985_v5  ;;  %v987_v6 = vld [vmem:[#allocation2 + $0x98] sm:$0xff]  ;;  %v93_v7 = vadd.f32 %v983_v4, %v979_v2  ;;  %v991_v8 = vld [vmem:[#allocation2 + $0x10] sm:$0xff]  ;;  %v999_v12 = vld [vmem:[#allocation2 + $0xa0] sm:$0xff]  ;;  %vm268_vm5 = vcmask 392512   ;;  %vm275_vm6 = vcmask 458112  }
  0x11   :  { %1466 = vst [vmem:[#allocation9_spill] sm:$0xff] %v987_v6  ;;  %v993_v9 = vld [vmem:[#allocation2 + $0x18] sm:$0xff]  ;;  %118 = vadd.xlane.f32.xlu1 %v117_v3  ;;  %v120_v10 = vadd.f32 %v987_v6, %v985_v5  ;;  %v1001_v13 = vld [vmem:[#allocation2 + $0xa8] sm:$0xff]  ;;  %v1003_v14 = vld [vmem:[#allocation2 + $0x20] sm:$0xff]  ;;  %vm282_vm7 = vcmask 523712   ;;  %vm401_vm8 = vcmask 1041409  }
  0x12   :  { %94 = vadd.xlane.f32.xlu0 %v93_v7  ;;  %v96_v11 = vadd.f32 %v993_v9, %v991_v8  ;;  %v1005_v15 = vld [vmem:[#allocation2 + $0x28] sm:$0xff]  ;;  %v123_v16 = vadd.f32 %v1001_v13, %v999_v12  ;;  %v1011_v18 = vld [vmem:[#allocation2 + $0x110] sm:$0xff]  ;;  %v1013_v19 = vld [vmem:[#allocation2 + $0x118] sm:$0xff]  ;;  %vm403_vm9 = vcmask 1042434   ;;  %vm405_vm10 = vcmask 1043459  }
  0x13   :  { %v99_v17 = vadd.f32 %v1005_v15, %v1003_v14  ;;  %1467 = vst [vmem:[#allocation10_spill] sm:$0xff] %v1011_v18  ;;  %1468 = vst [vmem:[#allocation11_spill] sm:$0xff] %v1013_v19  ;;  %v1015_v20 = vld [vmem:[#allocation2 + $0x100] sm:$0xff]  ;;  %v1017_v21 = vld [vmem:[#allocation2 + $0x108] sm:$0xff]  ;;  %v144_v22 = vadd.f32 %v1013_v19, %v1011_v18  ;;  %vm407_vm11 = vcmask 523264   ;;  %vm483_vm12 = vcmask 130048  }
  0x14   :  { %1469 = vst [vmem:[#allocation12_spill] sm:$0xff] %v1015_v20  ;;  %1470 = vst [vmem:[#allocation13_spill] sm:$0xff] %v1017_v21  ;;  %v141_v23 = vadd.f32 %v1017_v21, %v1015_v20  ;;  %v1023_v24 = vld [vmem:[#allocation2 + $0xb0] sm:$0xff]  ;;  %v1025_v25 = vld [vmem:[#allocation2 + $0xb8] sm:$0xff] }
  0x15   :  { %121 = vadd.xlane.f32.xlu1 %v120_v10  ;;  %1471 = vst [vmem:[#allocation14_spill] sm:$0xff] %v1023_v24  ;;  %1472 = vst [vmem:[#allocation15_spill] sm:$0xff] %v1025_v25  ;;  %v1027_v26 = vld [vmem:[#allocation2 + $0x30] sm:$0xff]  ;;  %v1029_v27 = vld [vmem:[#allocation2 + $0x38] sm:$0xff]  ;;  %v126_v28 = vadd.f32 %v1025_v25, %v1023_v24 }
  0x16   :  { %97 = vadd.xlane.f32.xlu0 %v96_v11  ;;  %v102_v29 = vadd.f32 %v1029_v27, %v1027_v26  ;;  %v1035_v30 = vld [vmem:[#allocation2 + $0x180] sm:$0xff]  ;;  %v1037_v31 = vld [vmem:[#allocation2 + $0x188] sm:$0xff]  ;;  %v1051_v38 = vld [vmem:[#allocation2 + $0x190] sm:$0xff] }
  0x17   :  { %1473 = vst [vmem:[#allocation16_spill] sm:$0xff] %v1035_v30  ;;  %1474 = vst [vmem:[#allocation17_spill] sm:$0xff] %v1037_v31  ;;  %v1039_v32 = vld [vmem:[#allocation2 + $0x120] sm:$0xff]  ;;  %v1041_v33 = vld [vmem:[#allocation2 + $0x128] sm:$0xff]  ;;  %v165_v34 = vadd.f32 %v1037_v31, %v1035_v30  ;;  %v229_v30 = vlaneseq }
  0x18   :  { %1475 = vst [vmem:[#allocation18_spill] sm:$0xff] %v1039_v32  ;;  %1476 = vst [vmem:[#allocation19_spill] sm:$0xff] %v1041_v33  ;;  %v147_v35 = vadd.f32 %v1041_v33, %v1039_v32  ;;  %v1047_v36 = vld [vmem:[#allocation2 + $0x40] sm:$0xff]  ;;  %v1049_v37 = vld [vmem:[#allocation2 + $0x48] sm:$0xff] }
  0x19   :  { %124 = vadd.xlane.f32.xlu1 %v123_v16  ;;  %1477 = vst [vmem:[#allocation20_spill] sm:$0xff] %v1051_v38  ;;  %v1053_v39 = vld [vmem:[#allocation2 + $0x198] sm:$0xff]  ;;  %v105_v40 = vadd.f32 %v1049_v37, %v1047_v36  ;;  %v1059_v42 = vld [vmem:[#allocation2 + $0x130] sm:$0xff]  ;;  %v1063_v44 = vld [vmem:[#allocation2 + $0xc0] sm:$0xff] }
  0x1a   :  { %100 = vadd.xlane.f32.xlu0 %v99_v17  ;;  %1478 = vst [vmem:[#allocation21_spill] sm:$0xff] %v1053_v39  ;;  %v168_v41 = vadd.f32 %v1053_v39, %v1051_v38  ;;  %1479 = vst [vmem:[#allocation22_spill] sm:$0xff] %v1059_v42  ;;  %v1061_v43 = vld [vmem:[#allocation2 + $0x138] sm:$0xff]  ;;  %v1065_v45 = vld [vmem:[#allocation2 + $0xc8] sm:$0xff] }
  0x1b   :  { %1480 = vst [vmem:[#allocation23_spill] sm:$0xff] %v1061_v43  ;;  %1481 = vst [vmem:[#allocation24_spill] sm:$0xff] %v1063_v44  ;;  %v150_v46 = vadd.f32 %v1061_v43, %v1059_v42  ;;  %v129_v47 = vadd.f32 %v1065_v45, %v1063_v44  ;;  %v1071_v48 = vld [vmem:[#allocation2 + $0x50] sm:$0xff]  ;;  %v1073_v49 = vld [vmem:[#allocation2 + $0x58] sm:$0xff] }
  0x1c   :  { %1482 = vst [vmem:[#allocation25_spill] sm:$0xff] %v1065_v45  ;;  %v1075_v50 = vld [vmem:[#allocation2 + $0x1a0] sm:$0xff]  ;;  %v1077_v51 = vld [vmem:[#allocation2 + $0x1a8] sm:$0xff]  ;;  %v108_v52 = vadd.f32 %v1073_v49, %v1071_v48  ;;  %v1087_v56 = vld [vmem:[#allocation2 + $0xd0] sm:$0xff] }
  0x1d   :  { %145 = vadd.xlane.f32.xlu1 %v144_v22  ;;  %1483 = vst [vmem:[#allocation26_spill] sm:$0xff] %v1075_v50  ;;  %1484 = vst [vmem:[#allocation27_spill] sm:$0xff] %v1077_v51  ;;  %v171_v53 = vadd.f32 %v1077_v51, %v1075_v50  ;;  %v1083_v54 = vld [vmem:[#allocation2 + $0x140] sm:$0xff]  ;;  %v1085_v55 = vld [vmem:[#allocation2 + $0x148] sm:$0xff] }
  0x1e   :  { %142 = vadd.xlane.f32.xlu0 %v141_v23  ;;  %1485 = vst [vmem:[#allocation28_spill] sm:$0xff] %v1083_v54  ;;  %1486 = vst [vmem:[#allocation29_spill] sm:$0xff] %v1085_v55  ;;  %v1089_v57 = vld [vmem:[#allocation2 + $0xd8] sm:$0xff]  ;;  %v153_v58 = vadd.f32 %v1085_v55, %v1083_v54  ;;  %v1095_v60 = vld [vmem:[#allocation2 + $0x60] sm:$0xff]  ;;  %v1236_v54 = vshrl.u32 %v229_v30, 7 }
  0x1f   :  { %1487 = vst [vmem:[#allocation30_spill] sm:$0xff] %v1087_v56  ;;  %1488 = vst [vmem:[#allocation31_spill] sm:$0xff] %v1089_v57  ;;  %v132_v59 = vadd.f32 %v1089_v57, %v1087_v56  ;;  %v1097_v61 = vld [vmem:[#allocation2 + $0x68] sm:$0xff]  ;;  %v1099_v62 = vld [vmem:[#allocation2 + $0x1b0] sm:$0xff] }
  0x20   :  { %1489 = vst [vmem:[#allocation32_spill] sm:$0xff] %v1099_v62  ;;  %v1101_v63 = vld [vmem:[#allocation2 + $0x1b8] sm:$0xff]  ;;  %v111_v3 = vadd.f32 %v1097_v61, %v1095_v60  ;;  %v1107_v10 = vld [vmem:[#allocation2 + $0x150] sm:$0xff]  ;;  %v1111_v16 = vld [vmem:[#allocation2 + $0xe0] sm:$0xff] }
  0x21   :  { %127 = vadd.xlane.f32.xlu1 %v126_v28  ;;  %1490 = vst [vmem:[#allocation33_spill] sm:$0xff] %v1101_v63  ;;  %v174_v7 = vadd.f32 %v1101_v63, %v1099_v62  ;;  %1491 = vst [vmem:[#allocation34_spill] sm:$0xff] %v1107_v10  ;;  %v1109_v11 = vld [vmem:[#allocation2 + $0x158] sm:$0xff]  ;;  %v1113_v17 = vld [vmem:[#allocation2 + $0xe8] sm:$0xff] }
  0x22   :  { %103 = vadd.xlane.f32.xlu0 %v102_v29  ;;  %1492 = vst [vmem:[#allocation35_spill] sm:$0xff] %v1109_v11  ;;  %1493 = vst [vmem:[#allocation36_spill] sm:$0xff] %v1111_v16  ;;  %v156_v22 = vadd.f32 %v1109_v11, %v1107_v10  ;;  %v135_v23 = vadd.f32 %v1113_v17, %v1111_v16  ;;  %v1119_v28 = vld [vmem:[#allocation2 + $0x70] sm:$0xff]  ;;  %v1121_v29 = vld [vmem:[#allocation2 + $0x78] sm:$0xff] }
  0x23   :  { %1494 = vst [vmem:[#allocation37_spill] sm:$0xff] %v1113_v17  ;;  %v1157_v62 = vld [vmem:[#allocation2 + $0x1f8] sm:$0xff] }
  0x24   :  { %1506 = vst [vmem:[#allocation49_spill] sm:$0xff] %v1157_v62 }
  0x25   :  { %166 = vadd.xlane.f32.xlu1 %v165_v34  ;;  %v1123_v34 = vld [vmem:[#allocation2 + $0x1c0] sm:$0xff] }
  0x26   :  { %148 = vadd.xlane.f32.xlu0 %v147_v35  ;;  %1495 = vst [vmem:[#allocation38_spill] sm:$0xff] %v1123_v34  ;;  %v1125_v35 = vld [vmem:[#allocation2 + $0x1c8] sm:$0xff] }
  0x27   :  { %1496 = vst [vmem:[#allocation39_spill] sm:$0xff] %v1125_v35 }
  0x29   :  { %106 = vadd.xlane.f32.xlu1 %v105_v40  ;;  %v114_v40 = vadd.f32 %v1121_v29, %v1119_v28 }
  0x2a   :  { %169 = vadd.xlane.f32.xlu0 %v168_v41  ;;  %v177_v41 = vadd.f32 %v1125_v35, %v1123_v34  ;;  %v1159_v35 = vld [vmem:[#allocation2 + $0x1e0] sm:$0xff]  ;;  %v1161_v34 = vld [vmem:[#allocation2 + $0x1e8] sm:$0xff] }
  0x2b   :  { %1507 = vst [vmem:[#allocation50_spill] sm:$0xff] %v1159_v35  ;;  %1508 = vst [vmem:[#allocation51_spill] sm:$0xff] %v1161_v34 }
  0x2d   :  { %151 = vadd.xlane.f32.xlu1 %v150_v46  ;;  %v1131_v46 = vld [vmem:[#allocation2 + $0x160] sm:$0xff] }
  0x2e   :  { %130 = vadd.xlane.f32.xlu0 %v129_v47  ;;  %1497 = vst [vmem:[#allocation40_spill] sm:$0xff] %v1131_v46  ;;  %v1133_v47 = vld [vmem:[#allocation2 + $0x168] sm:$0xff] }
  0x2f   :  { %1498 = vst [vmem:[#allocation41_spill] sm:$0xff] %v1133_v47 }
  0x31   :  { %109 = vadd.xlane.f32.xlu1 %v108_v52  ;;  %v1135_v52 = vld [vmem:[#allocation2 + $0xf0] sm:$0xff] }
  0x32   :  { %172 = vadd.xlane.f32.xlu0 %v171_v53  ;;  %1499 = vst [vmem:[#allocation42_spill] sm:$0xff] %v1135_v52  ;;  %v1137_v53 = vld [vmem:[#allocation2 + $0xf8] sm:$0xff] }
  0x33   :  { %1500 = vst [vmem:[#allocation43_spill] sm:$0xff] %v1137_v53 }
  0x35   :  { %154 = vadd.xlane.f32.xlu1 %v153_v58  ;;  %v159_v58 = vadd.f32 %v1133_v47, %v1131_v46  ;;  %v230_v47 = vand.u32 127, %v229_v30 }
  0x36   :  { %133 = vadd.xlane.f32.xlu0 %v132_v59  ;;  %v138_v59 = vadd.f32 %v1137_v53, %v1135_v52 }
  0x37   :  { %v235_v43 = vadd.s32 4294967288, %v230_v47  ;;  %v242_v42 = vadd.s32 4294967280, %v230_v47  ;;  %v249_v18 = vadd.s32 4294967272, %v230_v47  ;;  %v256_v32 = vadd.s32 4294967264, %v230_v47 }
  0x38   :  { %v263_v53 = vadd.s32 4294967256, %v230_v47  ;;  %v270_v21 = vadd.s32 4294967248, %v230_v47  ;;  %v233_v57 = vsub.s32 %v230_v47, %v1236_v54  ;;  %v277_v45 = vadd.s32 4294967240, %v230_v47 }
  0x39   :  { %112 = vadd.xlane.f32.xlu1 %v111_v3  ;;  %v1143_v3 = vld [vmem:[#allocation2 + $0x170] sm:$0xff]  ;;  %v238_v33 = vsub.s32 %v235_v43, %v1236_v54  ;;  %v1242_v52 = vsub.s32 %v242_v42, %v1236_v54  ;;  %v1250_v30 = vsub.s32 %v249_v18, %v1236_v54  ;;  %v1253_v43 = vsub.s32 %v256_v32, %v1236_v54 }
  0x3a   :  { %175 = vadd.xlane.f32.xlu0 %v174_v7  ;;  %1501 = vst [vmem:[#allocation44_spill] sm:$0xff] %v1143_v3  ;;  %v1145_v7 = vld [vmem:[#allocation2 + $0x178] sm:$0xff]  ;;  %v1256_v42 = vsub.s32 %v263_v53, %v1236_v54  ;;  %v1260_v24 = vsub.s32 %v270_v21, %v1236_v54 }
  0x3b   :  { %1502 = vst [vmem:[#allocation45_spill] sm:$0xff] %v1145_v7  ;;  %v162_v63 = vadd.f32 %v1145_v7, %v1143_v3 }
  0x3d   :  { %157 = vadd.xlane.f32.xlu1 %v156_v22  ;;  %v1147_v22 = vld [vmem:[#allocation2 + $0x1d0] sm:$0xff] }
  0x3e   :  { %136 = vadd.xlane.f32.xlu0 %v135_v23  ;;  %1503 = vst [vmem:[#allocation46_spill] sm:$0xff] %v1147_v22  ;;  %v1149_v23 = vld [vmem:[#allocation2 + $0x1d8] sm:$0xff] }
  0x3f   :  { %1504 = vst [vmem:[#allocation47_spill] sm:$0xff] %v1149_v23 }
  0x41   :  { %115 = vadd.xlane.f32.xlu1 %v114_v40  ;;  %v180_v40 = vadd.f32 %v1149_v23, %v1147_v22  ;;  %v196_v23 = vld [vmem:[%s1417_s1 + $0x38] sm:$0xff] }
  0x42   :  { %178 = vadd.xlane.f32.xlu0 %v177_v41  ;;  %v1155_v41 = vld [vmem:[#allocation2 + $0x1f0] sm:$0xff] }
  0x43   :  { %1505 = vst [vmem:[#allocation48_spill] sm:$0xff] %v1155_v41  ;;  %v186_v39 = vadd.f32 %v1157_v62, %v1155_v41 }
  0x45   :  { %160 = vadd.xlane.f32.xlu1 %v159_v58  ;;  %v183_v58 = vadd.f32 %v1161_v34, %v1159_v35 }
  0x46   :  { %139 = vadd.xlane.f32.xlu0 %v138_v59  ;;  %v1433_v59 = vmov 0.0  }
  0x47   :  { %863 = vmatprep.subr.mxu0 %v1433_v59  ;;  %882 = vmatprep.subr.mxu1 %v1433_v59 }
  0x48   :  { %864 = vmatpush3.msra.mxu0 %v196_v23  ;;  %v193_v23 = vld [vmem:[%s1417_s1 + $0x20] sm:$0xff]  ;;  %879 = vmatprep.mubr.msk.f32.mxu0 %vm947_vm0, %v1433_v59 }
  0x49   :  { %163 = vadd.xlane.f32.xlu1 %v162_v63  ;;  %865 = vmatprep.subr.mxu0 %v1433_v59  ;;  %v195_v63 = vld [vmem:[%s1417_s1 + $0x30] sm:$0xff] }
  0x4a   :  { %181 = vadd.xlane.f32.xlu0 %v180_v40  ;;  %866 = vmatpush3.msra.mxu0 %v195_v63  ;;  %v192_v40 = vld [vmem:[%s1417_s1 + $0x18] sm:$0xff]  ;;  %v190_v63 = vld [vmem:[%s1417_s1 + $0x8] sm:$0xff] }
  0x4b   :  { %867 = vmatprep.subr.mxu0 %v1433_v59  ;;  %886 = vmatprep.mubr.msk.f32.mxu1 %vm947_vm0, %v1433_v59 }
  0x4d   :  { %187 = vadd.xlane.f32.xlu1 %v186_v39  ;;  %v194_v39 = vld [vmem:[%s1417_s1 + $0x28] sm:$0xff] }
  0x4e   :  { %184 = vadd.xlane.f32.xlu0 %v183_v58  ;;  %868 = vmatpush3.msra.mxu0 %v194_v39  ;;  %v191_v58 = vld [vmem:[%s1417_s1 + $0x10] sm:$0xff]  ;;  %v189_v39 = vld [vmem:[%s1417_s1] sm:$0xff] }
  0x4f   :  { %869 = vmatprep.subr.mxu0 %v1433_v59 }
  0x50   :  { %870 = vmatpush3.msra.mxu0 %v193_v23 }
  0x51   :  { %871 = vmatprep.subr.mxu0 %v1433_v59 }
  0x52   :  { %872 = vmatpush3.msra.mxu0 %v192_v40 }
  0x53   :  { %873 = vmatprep.subr.mxu0 %v1433_v59 }
  0x54   :  { %874 = vmatpush3.msra.mxu0 %v191_v58 }
  0x55   :  { %875 = vmatprep.subr.mxu0 %v1433_v59 }
  0x56   :  { %876 = vmatpush3.msra.mxu0 %v190_v63 }
  0x57   :  { %877 = vmatprep.subr.mxu0 %v1433_v59 }
  0x58   :  { %878 = vmatpush3.msra.mxu0 %v189_v39 }
  0x9a   :  { %v119_v23 = vpop.xlane.xlu1 %118 }
  0x9b   :  { %v1202_v40 = vpop.xlane.xlu0 %94  ;;  %v287_v18 = vrot.slane %v119_v23, %v233_v57 }
  0x9e   :  { %v122_v58 = vpop.xlane.xlu1 %121 }
  0x9f   :  { %v98_v62 = vpop.xlane.xlu0 %97  ;;  %v291_v17 = vrot.slane %v122_v58, %v238_v33 }
  0xa0   :  { %v239_v16 = vrot.slane %v98_v62, %v238_v33  ;;  %v234_v62 = vrot.slane %v1202_v40, %v233_v57 }
  0xa1   :  { %v292_v23 = vsel %vm240_vm1, %v291_v17, %v287_v18 }
  0xa2   :  { %v125_v41 = vpop.xlane.xlu1 %124 }
  0xa3   :  { %v1204_v22 = vpop.xlane.xlu0 %100  ;;  %v296_v25 = vrot.slane %v125_v41, %v1242_v52 }
  0xa4   :  { %v246_v58 = vrot.slane %v1204_v22, %v1242_v52 }
  0xa5   :  { %v297_v40 = vsel %vm247_vm2, %v296_v25, %v292_v23 }
  0xa6   :  { %v1206_v63 = vpop.xlane.xlu1 %145 }
  0xa7   :  { %v1208_v34 = vpop.xlane.xlu0 %142  ;;  %v330_v32 = vrot.slane %v1206_v63, %v238_v33  ;;  %v241_v63 = vsel %vm240_vm1, %v239_v16, %v234_v62 }
  0xa8   :  { %v326_v6 = vrot.slane %v1208_v34, %v233_v57 }
  0xaa   :  { %v1210_v35 = vpop.xlane.xlu1 %127 }
  0xab   :  { %v1212_v39 = vpop.xlane.xlu0 %103  ;;  %v301_v41 = vrot.slane %v1210_v35, %v1250_v30  ;;  %v280_v35 = vsub.s32 %v277_v45, %v1236_v54 }
  0xac   :  { %v253_v21 = vrot.slane %v1212_v39, %v1250_v30  ;;  %v248_v39 = vsel %vm247_vm2, %v246_v58, %v241_v63 }
  0xae   :  { %v1214_v38 = vpop.xlane.xlu1 %166  ;;  %v255_v16 = vsel %vm254_vm3, %v253_v21, %v248_v39 }
  0xaf   :  { %v1216_v51 = vpop.xlane.xlu0 %148  ;;  %v365_v17 = vrot.slane %v1214_v38, %v233_v57 }
  0xb0   :  { %v335_v47 = vrot.slane %v1216_v51, %v1242_v52  ;;  %v331_v51 = vsel %vm240_vm1, %v330_v32, %v326_v6 }
  0xb2   :  { %v1218_v59 = vpop.xlane.xlu1 %106  ;;  %v336_v25 = vsel %vm247_vm2, %v335_v47, %v331_v51 }
  0xb3   :  { %v1220_v50 = vpop.xlane.xlu0 %169  ;;  %v260_v22 = vrot.slane %v1218_v59, %v1253_v43 }
  0xb4   :  { %v369_v34 = vrot.slane %v1220_v50, %v238_v33  ;;  %v302_v50 = vsel %vm254_vm3, %v301_v41, %v297_v40 }
  0xb5   :  { %v262_v18 = vsel %vm261_vm4, %v260_v22, %v255_v16 }
  0xb6   :  { %v1222_v7 = vpop.xlane.xlu1 %151  ;;  %v370_v6 = vsel %vm240_vm1, %v369_v34, %v365_v17 }
  0xb7   :  { %v1224_v3 = vpop.xlane.xlu0 %130  ;;  %v340_v59 = vrot.slane %v1222_v7, %v1250_v30 }
  0xb8   :  { %v306_v45 = vrot.slane %v1224_v3, %v1253_v43 }
  0xb9   :  { %v341_v41 = vsel %vm254_vm3, %v340_v59, %v336_v25 }
  0xba   :  { %v1226_v31 = vpop.xlane.xlu1 %109 }
  0xbb   :  { %v1228_v11 = vpop.xlane.xlu0 %172  ;;  %v267_v7 = vrot.slane %v1226_v31, %v1256_v42  ;;  %v307_v31 = vsel %vm261_vm4, %v306_v45, %v302_v50 }
  0xbc   :  { %v374_v58 = vrot.slane %v1228_v11, %v1242_v52 }
  0xbe   :  { %v1230_v10 = vpop.xlane.xlu1 %154 }
  0xbf   :  { %v1232_v46 = vpop.xlane.xlu0 %133  ;;  %v345_v38 = vrot.slane %v1230_v10, %v1253_v43 }
  0xc0   :  { %v311_v57 = vrot.slane %v1232_v46, %v1256_v42 }
  0xc2   :  { %v1234_v55 = vpop.xlane.xlu1 %112  ;;  %v312_v23 = vsel %vm268_vm5, %v311_v57, %v307_v31  ;;  %v600_v31 = vsub.s32 1, %v1236_v54 }
  0xc3   :  { %v1238_v19 = vpop.xlane.xlu0 %175  ;;  %v274_v11 = vrot.slane %v1234_v55, %v1260_v24 }
  0xc4   :  { %v379_v10 = vrot.slane %v1238_v19, %v1250_v30  ;;  %v375_v30 = vsel %vm247_vm2, %v374_v58, %v370_v6  ;;  %v1509_v6 = vmov 0.0  }
  0xc6   :  { %v1244_v20 = vpop.xlane.xlu1 %157 }
  0xc7   :  { %v1247_v56 = vpop.xlane.xlu0 %136  ;;  %v350_v3 = vrot.slane %v1244_v20, %v1256_v42 }
  0xc8   :  { %v316_v32 = vrot.slane %v1247_v56, %v1260_v24  ;;  %v346_v56 = vsel %vm261_vm4, %v345_v38, %v341_v41  ;;  %v481_v38 = vld [vmem:[%s1418_s2] sm:$0xff] }
  0xc9   :  { %v351_v34 = vsel %vm268_vm5, %v350_v3, %v346_v56  ;;  %v670_v56 = vsub.s32 3, %v1236_v54 }
  0xca   :  { %v1262_v44 = vpop.xlane.xlu1 %115  ;;  %v317_v63 = vsel %vm275_vm6, %v316_v32, %v312_v23 }
  0xcb   :  { %v179_v53 = vpop.xlane.xlu0 %178  ;;  %v281_v22 = vrot.slane %v1262_v44, %v280_v35 }
  0xcc   :  { %v384_v20 = vrot.slane %v179_v53, %v1253_v43  ;;  %v380_v43 = vsel %vm254_vm3, %v379_v10, %v375_v30 }
  0xce   :  { %v161_v5 = vpop.xlane.xlu1 %160 }
  0xcf   :  { %v140_v33 = vpop.xlane.xlu0 %139  ;;  %v355_v46 = vrot.slane %v161_v5, %v1260_v24  ;;  %v269_v5 = vsel %vm268_vm5, %v267_v7, %v262_v18 }
  0xd0   :  { %v321_v21 = vrot.slane %v140_v33, %v280_v35  ;;  %v276_v44 = vsel %vm275_vm6, %v274_v11, %v269_v5 }
  0xd1   :  { %v356_v53 = vsel %vm275_vm6, %v355_v46, %v351_v34  ;;  %v283_v33 = vsel %vm282_vm7, %v281_v22, %v276_v44  ;;  %v565_v46 = vsub.s32 0, %v1236_v54 }
  0xd2   :  { %v164_v62 = vpop.xlane.xlu1 %163  ;;  %v322_v40 = vsel %vm282_vm7, %v321_v21, %v317_v63 }
  0xd3   :  { %v182_v47 = vpop.xlane.xlu0 %181  ;;  %v360_v52 = vrot.slane %v164_v62, %v280_v35  ;;  %v402_v16 = vsel %vm401_vm8, %v322_v40, %v283_v33 }
  0xd4   :  { %v389_v19 = vrot.slane %v182_v47, %v1256_v42  ;;  %v385_v42 = vsel %vm261_vm4, %v384_v20, %v380_v43  ;;  %v635_v20 = vsub.s32 2, %v1236_v54 }
  0xd5   :  { %v361_v17 = vsel %vm282_vm7, %v360_v52, %v356_v53 }
  0xd6   :  { %v188_v55 = vpop.xlane.xlu1 %187  ;;  %v390_v50 = vsel %vm268_vm5, %v389_v19, %v385_v42  ;;  %v404_v45 = vsel %vm403_vm9, %v361_v17, %v402_v16 }
  0xd7   :  { %v185_v39 = vpop.xlane.xlu0 %184  ;;  %v399_v51 = vrot.slane %v188_v55, %v280_v35 }
  0xd8   :  { %v394_v59 = vrot.slane %v185_v39, %v1260_v24  ;;  %v482_v24 = vld [vmem:[%s1418_s2 + $0x8] sm:$0xff]  ;;  %s948_s2 = smov [#allocation5]  }
  0xd9   :  { %883 = vmatpush3.msra.mxu1 %v482_v24  ;;  %v1515_v24 = vld [vmem:[#allocation15_spill] sm:$0xff]  ;;  %s836_s10 = sshll.u32 %s948_s2, 4  ;;  %s837_s10 = int_to_ptr.vmem [resolvable:$true] %s836_s10 }
  0xda   :  { %v395_v25 = vsel %vm275_vm6, %v394_v59, %v390_v50  ;;  %884 = vmatprep.subr.mxu1 %v1509_v6  ;;  %v1511_v50 = vld [vmem:[#allocation9_spill] sm:$0xff]  ;;  %s919_s11 = scalar_lea.vmem %s837_s10, 8192  ;;  %p924_p6 = scmp.lt.s32.totalorder %s837_s10, %s837_s10 }
  0xdb   :  { %v400_v35 = vsel %vm282_vm7, %v399_v51, %v395_v25  ;;  %885 = vmatpush3.msra.mxu1 %v481_v38  ;;  %v1512_v25 = vld [vmem:[#allocation24_spill] sm:$0xff]  ;;  %p920_p5 = scmp.ne.s32.totalorder %s837_s10, %s919_s11  ;;  %p925_p7 = scmp.lt.s32.totalorder %s919_s11, %s919_s11 }
  0xdc   :  { %v406_v18 = vsel %vm405_vm10, %v400_v35, %v404_v45  ;;  %v1513_v45 = vld [vmem:[#allocation25_spill] sm:$0xff]  ;;  %v1516_v38 = vld [vmem:[#allocation36_spill] sm:$0xff] }
  0xdd   :  { %880 = vmatmul.mubr.msk.f32.vlgmr.msra.gmra.mxu0 %vm407_vm11, %v406_v18  ;;  %p926_p8 = por %p925_p7, %p924_p6 }
  0xdf   :  { %p927_p9 = pnand %p926_p8, %p920_p5 }
 0x19d   :  { %v476_v57 = vpop.f32.mrf.mxu0 }
 0x19e   :  { %v480_v7 = vmax.f32 %v476_v57, 0.0 }
 0x19f   :  { %v881_v58 = vpop.f32.mrf.mxu0 }
 0x1a0   :  { %887 = vmatmul.mubr.msk.f32.vlgmr.msra.gmra.mxu1 %vm483_vm12, %v480_v7  ;;  %v1517_v7 = vld [vmem:[#allocation37_spill] sm:$0xff] }
 0x260   :  { %v553_v3 = vpop.f32.mrf.mxu1 }
 0x261   :  { %v850_v32 = vmul.f32 -1.442695, %v553_v3 }
 0x262   :  { %v888_v62 = vpop.f32.mrf.mxu1 }
 0x263   :  { %895 = vpow2.f32 %v850_v32  ;;  %v1518_v62 = vld [vmem:[#allocation30_spill] sm:$0xff] }
 0x270   :  { %v896_v41 = vpop.eup %895 }
 0x271   :  { %v560_v10 = vadd.f32 1.0, %v896_v41 }
 0x273   :  { %897 = vrcp.f32 %v560_v10  ;;  %v1519_v10 = vld [vmem:[#allocation31_spill] sm:$0xff] }
 0x280   :  { %v898_v21 = vpop.eup %897 }
 0x281   :  { %v566_v47 = vrot.slane %v898_v21, %v565_v46  ;;  %v601_v11 = vrot.slane %v898_v21, %v600_v31  ;;  %v636_v52 = vrot.slane %v898_v21, %v635_v20  ;;  %v671_v23 = vrot.slane %v898_v21, %v670_v56  ;;  %v1520_v21 = vld [vmem:[#allocation12_spill] sm:$0xff]  ;;  %v1521_v31 = vld [vmem:[#allocation13_spill] sm:$0xff]  ;;  %v1522_v56 = vld [vmem:[#allocation42_spill] sm:$0xff] }
 0x283   :  { %572 = vbcast.lane.b32.xlu1 %v566_v47, 264  ;;  %568 = vbcast.lane.b32.xlu0 %v566_v47, 256 }
 0x287   :  { %576 = vbcast.lane.b32.xlu1 %v566_v47, 272  ;;  %584 = vbcast.lane.b32.xlu0 %v566_v47, 288 }
 0x28b   :  { %580 = vbcast.lane.b32.xlu1 %v566_v47, 280  ;;  %592 = vbcast.lane.b32.xlu0 %v566_v47, 304 }
 0x28f   :  { %588 = vbcast.lane.b32.xlu1 %v566_v47, 296  ;;  %603 = vbcast.lane.b32.xlu0 %v601_v11, 256 }
 0x293   :  { %596 = vbcast.lane.b32.xlu1 %v566_v47, 312  ;;  %611 = vbcast.lane.b32.xlu0 %v601_v11, 272 }
 0x297   :  { %607 = vbcast.lane.b32.xlu1 %v601_v11, 264  ;;  %619 = vbcast.lane.b32.xlu0 %v601_v11, 288 }
 0x29b   :  { %615 = vbcast.lane.b32.xlu1 %v601_v11, 280  ;;  %627 = vbcast.lane.b32.xlu0 %v601_v11, 304 }
 0x29f   :  { %623 = vbcast.lane.b32.xlu1 %v601_v11, 296  ;;  %638 = vbcast.lane.b32.xlu0 %v636_v52, 256 }
 0x2a3   :  { %631 = vbcast.lane.b32.xlu1 %v601_v11, 312  ;;  %646 = vbcast.lane.b32.xlu0 %v636_v52, 272 }
 0x2a7   :  { %642 = vbcast.lane.b32.xlu1 %v636_v52, 264  ;;  %654 = vbcast.lane.b32.xlu0 %v636_v52, 288 }
 0x2ab   :  { %650 = vbcast.lane.b32.xlu1 %v636_v52, 280  ;;  %662 = vbcast.lane.b32.xlu0 %v636_v52, 304 }
 0x2af   :  { %658 = vbcast.lane.b32.xlu1 %v636_v52, 296  ;;  %673 = vbcast.lane.b32.xlu0 %v671_v23, 256 }
 0x2b3   :  { %666 = vbcast.lane.b32.xlu1 %v636_v52, 312  ;;  %681 = vbcast.lane.b32.xlu0 %v671_v23, 272 }
 0x2b7   :  { %677 = vbcast.lane.b32.xlu1 %v671_v23, 264  ;;  %689 = vbcast.lane.b32.xlu0 %v671_v23, 288 }
 0x2bb   :  { %685 = vbcast.lane.b32.xlu1 %v671_v23, 280  ;;  %697 = vbcast.lane.b32.xlu0 %v671_v23, 304 }
 0x2bf   :  { %693 = vbcast.lane.b32.xlu1 %v671_v23, 296 }
 0x2c3   :  { %701 = vbcast.lane.b32.xlu1 %v671_v23, 312 }
 0x2f5   :  { %v573_v22 = vpop.permute.xlu1 %572  ;;  %v569_v19 = vpop.permute.xlu0 %568 }
 0x2f6   :  { %v705_v5 = vmul.f32 %v573_v22, %v991_v8  ;;  %v706_v30 = vmul.f32 %v573_v22, %v993_v9  ;;  %v703_v54 = vmul.f32 %v569_v19, %v979_v2  ;;  %v704_v34 = vmul.f32 %v569_v19, %v983_v4  ;;  %v1523_v22 = vld [vmem:[#allocation43_spill] sm:$0xff] }
 0x2f8   :  { %769 = vst [vmem:[#allocation5 + $0x10] sm:$0xff] %v705_v5  ;;  %770 = vst [vmem:[#allocation5 + $0x18] sm:$0xff] %v706_v30  ;;  %v1524_v5 = vld [vmem:[#allocation18_spill] sm:$0xff] }
 0x2f9   :  { %767 = vst [vmem:[#allocation5] sm:$0xff] %v703_v54  ;;  %768 = vst [vmem:[#allocation5 + $0x8] sm:$0xff] %v704_v34  ;;  %v577_v63 = vpop.permute.xlu1 %576  ;;  %v585_v55 = vpop.permute.xlu0 %584  ;;  %v1525_v54 = vld [vmem:[#allocation19_spill] sm:$0xff] }
 0x2fa   :  { %v707_v43 = vmul.f32 %v577_v63, %v1003_v14  ;;  %v708_v53 = vmul.f32 %v577_v63, %v1005_v15  ;;  %v711_v40 = vmul.f32 %v585_v55, %v1047_v36  ;;  %v712_v8 = vmul.f32 %v585_v55, %v1049_v37 }
 0x2fc   :  { %771 = vst [vmem:[#allocation5 + $0x20] sm:$0xff] %v707_v43  ;;  %772 = vst [vmem:[#allocation5 + $0x28] sm:$0xff] %v708_v53  ;;  %v1526_v43 = vld [vmem:[#allocation10_spill] sm:$0xff] }
 0x2fd   :  { %775 = vst [vmem:[#allocation5 + $0x40] sm:$0xff] %v711_v40  ;;  %776 = vst [vmem:[#allocation5 + $0x48] sm:$0xff] %v712_v8  ;;  %v581_v2 = vpop.permute.xlu1 %580  ;;  %v593_v4 = vpop.permute.xlu0 %592  ;;  %v1527_v40 = vld [vmem:[#allocation11_spill] sm:$0xff] }
 0x2fe   :  { %v709_v9 = vmul.f32 %v581_v2, %v1027_v26  ;;  %v710_v39 = vmul.f32 %v581_v2, %v1029_v27  ;;  %v715_v51 = vmul.f32 %v593_v4, %v1095_v60  ;;  %v716_v14 = vmul.f32 %v593_v4, %v1097_v61  ;;  %v1528_v2 = vld [vmem:[#allocation28_spill] sm:$0xff] }
 0x300   :  { %773 = vst [vmem:[#allocation5 + $0x30] sm:$0xff] %v709_v9  ;;  %774 = vst [vmem:[#allocation5 + $0x38] sm:$0xff] %v710_v39  ;;  %v1529_v9 = vld [vmem:[#allocation29_spill] sm:$0xff] }
 0x301   :  { %779 = vst [vmem:[#allocation5 + $0x60] sm:$0xff] %v715_v51  ;;  %780 = vst [vmem:[#allocation5 + $0x68] sm:$0xff] %v716_v14  ;;  %v589_v15 = vpop.permute.xlu1 %588  ;;  %v604_v36 = vpop.permute.xlu0 %603 }
 0x302   :  { %v713_v37 = vmul.f32 %v589_v15, %v1071_v48  ;;  %v714_v44 = vmul.f32 %v589_v15, %v1073_v49  ;;  %v719_v42 = vmul.f32 %v604_v36, %v975_v0  ;;  %v720_v26 = vmul.f32 %v604_v36, %v977_v1  ;;  %v1510_v49 = vld [vmem:[#allocation8_spill] sm:$0xff]  ;;  %v1530_v15 = vld [vmem:[#allocation22_spill] sm:$0xff] }
 0x304   :  { %777 = vst [vmem:[#allocation5 + $0x50] sm:$0xff] %v713_v37  ;;  %778 = vst [vmem:[#allocation5 + $0x58] sm:$0xff] %v714_v44  ;;  %v1531_v37 = vld [vmem:[#allocation23_spill] sm:$0xff] }
 0x305   :  { %783 = vst [vmem:[#allocation5 + $0x80] sm:$0xff] %v719_v42  ;;  %784 = vst [vmem:[#allocation5 + $0x88] sm:$0xff] %v720_v26  ;;  %v597_v27 = vpop.permute.xlu1 %596  ;;  %v612_v60 = vpop.permute.xlu0 %611  ;;  %v1532_v42 = vld [vmem:[#allocation40_spill] sm:$0xff] }
 0x306   :  { %v717_v61 = vmul.f32 %v597_v27, %v1119_v28  ;;  %v718_v17 = vmul.f32 %v597_v27, %v1121_v29  ;;  %v723_v59 = vmul.f32 %v612_v60, %v999_v12  ;;  %v724_v48 = vmul.f32 %v612_v60, %v1001_v13  ;;  %v1514_v29 = vld [vmem:[#allocation14_spill] sm:$0xff]  ;;  %v1533_v27 = vld [vmem:[#allocation41_spill] sm:$0xff] }
 0x308   :  { %781 = vst [vmem:[#allocation5 + $0x70] sm:$0xff] %v717_v61  ;;  %782 = vst [vmem:[#allocation5 + $0x78] sm:$0xff] %v718_v17 }
 0x309   :  { %787 = vst [vmem:[#allocation5 + $0xa0] sm:$0xff] %v723_v59  ;;  %788 = vst [vmem:[#allocation5 + $0xa8] sm:$0xff] %v724_v48  ;;  %v608_v0 = vpop.permute.xlu1 %607  ;;  %v620_v1 = vpop.permute.xlu0 %619  ;;  %v1534_v59 = vld [vmem:[#allocation34_spill] sm:$0xff] }
 0x30a   :  { %v721_v33 = vmul.f32 %v608_v0, %v1510_v49  ;;  %v722_v16 = vmul.f32 %v608_v0, %v1511_v50  ;;  %v727_v35 = vmul.f32 %v620_v1, %v1512_v25  ;;  %v728_v28 = vmul.f32 %v620_v1, %v1513_v45  ;;  %v1535_v0 = vld [vmem:[#allocation35_spill] sm:$0xff]  ;;  %v1536_v49 = vld [vmem:[#allocation16_spill] sm:$0xff]  ;;  %v1537_v50 = vld [vmem:[#allocation17_spill] sm:$0xff] }
 0x30b   :  { %v1538_v45 = vld [vmem:[#allocation44_spill] sm:$0xff] }
 0x30c   :  { %785 = vst [vmem:[#allocation5 + $0x90] sm:$0xff] %v721_v33  ;;  %786 = vst [vmem:[#allocation5 + $0x98] sm:$0xff] %v722_v16 }
 0x30d   :  { %791 = vst [vmem:[#allocation5 + $0xc0] sm:$0xff] %v727_v35  ;;  %792 = vst [vmem:[#allocation5 + $0xc8] sm:$0xff] %v728_v28  ;;  %v616_v12 = vpop.permute.xlu1 %615  ;;  %v628_v13 = vpop.permute.xlu0 %627 }
 0x30e   :  { %v725_v18 = vmul.f32 %v616_v12, %v1514_v29  ;;  %v726_v6 = vmul.f32 %v616_v12, %v1515_v24  ;;  %v731_v57 = vmul.f32 %v628_v13, %v1516_v38  ;;  %v732_v58 = vmul.f32 %v628_v13, %v1517_v7  ;;  %v1539_v12 = vld [vmem:[#allocation45_spill] sm:$0xff]  ;;  %v1540_v29 = vld [vmem:[#allocation26_spill] sm:$0xff]  ;;  %v1541_v24 = vld [vmem:[#allocation27_spill] sm:$0xff] }
 0x30f   :  { %v1542_v7 = vld [vmem:[#allocation20_spill] sm:$0xff] }
 0x310   :  { %789 = vst [vmem:[#allocation5 + $0xb0] sm:$0xff] %v725_v18  ;;  %790 = vst [vmem:[#allocation5 + $0xb8] sm:$0xff] %v726_v6 }
 0x311   :  { %795 = vst [vmem:[#allocation5 + $0xe0] sm:$0xff] %v731_v57  ;;  %796 = vst [vmem:[#allocation5 + $0xe8] sm:$0xff] %v732_v58  ;;  %v624_v3 = vpop.permute.xlu1 %623  ;;  %v639_v32 = vpop.permute.xlu0 %638 }
 0x312   :  { %v729_v41 = vmul.f32 %v624_v3, %v1518_v62  ;;  %v730_v46 = vmul.f32 %v624_v3, %v1519_v10  ;;  %v735_v47 = vmul.f32 %v639_v32, %v1520_v21  ;;  %v736_v11 = vmul.f32 %v639_v32, %v1521_v31  ;;  %v1543_v3 = vld [vmem:[#allocation21_spill] sm:$0xff]  ;;  %v1544_v62 = vld [vmem:[#allocation38_spill] sm:$0xff]  ;;  %v1545_v10 = vld [vmem:[#allocation39_spill] sm:$0xff] }
 0x313   :  { %v1546_v31 = vld [vmem:[#allocation32_spill] sm:$0xff] }
 0x314   :  { %793 = vst [vmem:[#allocation5 + $0xd0] sm:$0xff] %v729_v41  ;;  %794 = vst [vmem:[#allocation5 + $0xd8] sm:$0xff] %v730_v46 }
 0x315   :  { %799 = vst [vmem:[#allocation5 + $0x100] sm:$0xff] %v735_v47  ;;  %800 = vst [vmem:[#allocation5 + $0x108] sm:$0xff] %v736_v11  ;;  %v632_v20 = vpop.permute.xlu1 %631  ;;  %v647_v52 = vpop.permute.xlu0 %646 }
 0x316   :  { %v733_v23 = vmul.f32 %v632_v20, %v1522_v56  ;;  %v734_v19 = vmul.f32 %v632_v20, %v1523_v22  ;;  %v739_v30 = vmul.f32 %v647_v52, %v1524_v5  ;;  %v740_v34 = vmul.f32 %v647_v52, %v1525_v54  ;;  %v1547_v20 = vld [vmem:[#allocation33_spill] sm:$0xff]  ;;  %v1548_v56 = vld [vmem:[#allocation50_spill] sm:$0xff]  ;;  %v1549_v22 = vld [vmem:[#allocation51_spill] sm:$0xff] }
 0x318   :  { %797 = vst [vmem:[#allocation5 + $0xf0] sm:$0xff] %v733_v23  ;;  %798 = vst [vmem:[#allocation5 + $0xf8] sm:$0xff] %v734_v19 }
 0x319   :  { %803 = vst [vmem:[#allocation5 + $0x120] sm:$0xff] %v739_v30  ;;  %804 = vst [vmem:[#allocation5 + $0x128] sm:$0xff] %v740_v34  ;;  %v643_v63 = vpop.permute.xlu1 %642  ;;  %v655_v55 = vpop.permute.xlu0 %654  ;;  %v1550_v30 = vld [vmem:[#allocation46_spill] sm:$0xff]  ;;  %v1551_v34 = vld [vmem:[#allocation47_spill] sm:$0xff] }
 0x31a   :  { %v737_v53 = vmul.f32 %v643_v63, %v1526_v43  ;;  %v738_v8 = vmul.f32 %v643_v63, %v1527_v40  ;;  %v743_v4 = vmul.f32 %v655_v55, %v1528_v2  ;;  %v744_v39 = vmul.f32 %v655_v55, %v1529_v9  ;;  %v1552_v43 = vld [vmem:[#allocation48_spill] sm:$0xff]  ;;  %v1553_v40 = vld [vmem:[#allocation49_spill] sm:$0xff] }
 0x31c   :  { %801 = vst [vmem:[#allocation5 + $0x110] sm:$0xff] %v737_v53  ;;  %802 = vst [vmem:[#allocation5 + $0x118] sm:$0xff] %v738_v8 }
 0x31d   :  { %807 = vst [vmem:[#allocation5 + $0x140] sm:$0xff] %v743_v4  ;;  %808 = vst [vmem:[#allocation5 + $0x148] sm:$0xff] %v744_v39  ;;  %v651_v51 = vpop.permute.xlu1 %650  ;;  %v663_v14 = vpop.permute.xlu0 %662 }
 0x31e   :  { %v741_v36 = vmul.f32 %v651_v51, %v1530_v15  ;;  %v742_v44 = vmul.f32 %v651_v51, %v1531_v37  ;;  %v747_v26 = vmul.f32 %v663_v14, %v1532_v42  ;;  %v748_v60 = vmul.f32 %v663_v14, %v1533_v27 }
 0x320   :  { %805 = vst [vmem:[#allocation5 + $0x130] sm:$0xff] %v741_v36  ;;  %806 = vst [vmem:[#allocation5 + $0x138] sm:$0xff] %v742_v44 }
 0x321   :  { %811 = vst [vmem:[#allocation5 + $0x160] sm:$0xff] %v747_v26  ;;  %812 = vst [vmem:[#allocation5 + $0x168] sm:$0xff] %v748_v60  ;;  %v659_v61 = vpop.permute.xlu1 %658  ;;  %v674_v17 = vpop.permute.xlu0 %673 }
 0x322   :  { %v745_v48 = vmul.f32 %v659_v61, %v1534_v59  ;;  %v746_v1 = vmul.f32 %v659_v61, %v1535_v0  ;;  %v751_v33 = vmul.f32 %v674_v17, %v1536_v49  ;;  %v752_v16 = vmul.f32 %v674_v17, %v1537_v50 }
 0x324   :  { %809 = vst [vmem:[#allocation5 + $0x150] sm:$0xff] %v745_v48  ;;  %810 = vst [vmem:[#allocation5 + $0x158] sm:$0xff] %v746_v1 }
 0x325   :  { %815 = vst [vmem:[#allocation5 + $0x180] sm:$0xff] %v751_v33  ;;  %816 = vst [vmem:[#allocation5 + $0x188] sm:$0xff] %v752_v16  ;;  %v667_v25 = vpop.permute.xlu1 %666  ;;  %v682_v35 = vpop.permute.xlu0 %681 }
 0x326   :  { %v749_v28 = vmul.f32 %v667_v25, %v1538_v45  ;;  %v750_v13 = vmul.f32 %v667_v25, %v1539_v12  ;;  %v755_v18 = vmul.f32 %v682_v35, %v1540_v29  ;;  %v756_v6 = vmul.f32 %v682_v35, %v1541_v24 }
 0x328   :  { %813 = vst [vmem:[#allocation5 + $0x170] sm:$0xff] %v749_v28  ;;  %814 = vst [vmem:[#allocation5 + $0x178] sm:$0xff] %v750_v13 }
 0x329   :  { %819 = vst [vmem:[#allocation5 + $0x1a0] sm:$0xff] %v755_v18  ;;  %820 = vst [vmem:[#allocation5 + $0x1a8] sm:$0xff] %v756_v6  ;;  %v678_v38 = vpop.permute.xlu1 %677  ;;  %v690_v57 = vpop.permute.xlu0 %689 }
 0x32a   :  { %v753_v58 = vmul.f32 %v678_v38, %v1542_v7  ;;  %v754_v32 = vmul.f32 %v678_v38, %v1543_v3  ;;  %v759_v41 = vmul.f32 %v690_v57, %v1544_v62  ;;  %v760_v46 = vmul.f32 %v690_v57, %v1545_v10 }
 0x32c   :  { %817 = vst [vmem:[#allocation5 + $0x190] sm:$0xff] %v753_v58  ;;  %818 = vst [vmem:[#allocation5 + $0x198] sm:$0xff] %v754_v32 }
 0x32d   :  { %823 = vst [vmem:[#allocation5 + $0x1c0] sm:$0xff] %v759_v41  ;;  %824 = vst [vmem:[#allocation5 + $0x1c8] sm:$0xff] %v760_v46  ;;  %v686_v21 = vpop.permute.xlu1 %685  ;;  %v698_v47 = vpop.permute.xlu0 %697 }
 0x32e   :  { %v757_v11 = vmul.f32 %v686_v21, %v1546_v31  ;;  %v758_v52 = vmul.f32 %v686_v21, %v1547_v20  ;;  %v763_v23 = vmul.f32 %v698_v47, %v1548_v56  ;;  %v764_v19 = vmul.f32 %v698_v47, %v1549_v22 }
 0x330   :  { %821 = vst [vmem:[#allocation5 + $0x1b0] sm:$0xff] %v757_v11  ;;  %822 = vst [vmem:[#allocation5 + $0x1b8] sm:$0xff] %v758_v52 }
 0x331   :  { %827 = vst [vmem:[#allocation5 + $0x1e0] sm:$0xff] %v763_v23  ;;  %828 = vst [vmem:[#allocation5 + $0x1e8] sm:$0xff] %v764_v19  ;;  %v694_v5 = vpop.permute.xlu1 %693 }
 0x332   :  { %v761_v54 = vmul.f32 %v694_v5, %v1550_v30  ;;  %v762_v63 = vmul.f32 %v694_v5, %v1551_v34 }
 0x334   :  { %825 = vst [vmem:[#allocation5 + $0x1d0] sm:$0xff] %v761_v54  ;;  %826 = vst [vmem:[#allocation5 + $0x1d8] sm:$0xff] %v762_v63 }
 0x335   :  { %v702_v55 = vpop.permute.xlu1 %701 }
 0x336   :  { %v765_v53 = vmul.f32 %v702_v55, %v1552_v43  ;;  %v766_v8 = vmul.f32 %v702_v55, %v1553_v40 }
 0x338   :  { %829 = vst [vmem:[#allocation5 + $0x1f0] sm:$0xff] %v765_v53  ;;  %830 = vst [vmem:[#allocation5 + $0x1f8] sm:$0xff] %v766_v8 }
 0x339   :  { %930 = shalt.err (!%p927_p9)
}
 0x33a   :  { %842 = dma.vmem_to_hbm [thread:$0]  %s837_s10, 8192, %s1419_s3, [#allocation4], %s944_s15, %s944_s15, %s945_s16  }
 0x33b   :  { %941 = dma.done.wait [#allocation4], 8192  }
 0x33c   :  { %942 = vsyncadd [#allocation4], 4294959104 }
 0x33d   :  { %846 = vsyncpa [#allocation3], 1 }
 0x33e   :  { %847 = vsyncpa [#allocation4], 1 }

</bundles_post_ra>
